<compile_context>
chip_gen: v5e
topology: v5e:2x2
jax: 0.10.0
libtpu: 0.0.40
codegen_flags: <defaults>
</compile_context>

<pallas_src>
import numpy as np
import jax
import jax.numpy as jnp
from jax.experimental import pallas as pl
from jax.experimental.pallas import tpu as pltpu


def _round_up(x, m):
    return ((x + m - 1) // m) * m


# ----------------------------------------------------------------------------
# Pallas kernel: fused (scale||translate) residual MLP + affine coupling
# ----------------------------------------------------------------------------
def _coupling_kernel(net_in_ref, x_trans_ref,
                     wi_ref, bi_ref, w1_ref, b1_ref, w2_ref, b2_ref,
                     wo_ref, bo_ref,
                     y_trans_ref, s_ref):
    xin = net_in_ref[...]                                         # (TB, IN_P)

    # fused residual MLP: s-net occupies lanes [0,H), t-net lanes [H,2H)
    h = jnp.dot(xin, wi_ref[...], preferred_element_type=jnp.float32) + bi_ref[...]
    h = jnp.maximum(h, 0.0)
    r = jnp.dot(h, w1_ref[...], preferred_element_type=jnp.float32) + b1_ref[...]
    h = h + jnp.maximum(r, 0.0)
    r = jnp.dot(h, w2_ref[...], preferred_element_type=jnp.float32) + b2_ref[...]
    h = h + jnp.maximum(r, 0.0)
    out = jnp.dot(h, wo_ref[...], preferred_element_type=jnp.float32) + bo_ref[...]

    tp = s_ref.shape[-1]                                          # padded trans width (mult. of 128)
    s = out[:, :tp]                                               # vreg-aligned slices
    t = out[:, tp:]

    y_trans_ref[...] = x_trans_ref[...] * jnp.exp(s) + t          # affine coupling
    s_ref[...] = s                                                # lane-dense; reduced in wrapper


def _coupling_pallas(net_in_p, x_trans_p, fused_params, *, batch_tile):
    Bp, in_p = net_in_p.shape
    _, tp = x_trans_p.shape
    assert Bp % batch_tile == 0
    grid = (Bp // batch_tile,)

    def batch_spec(width):
        return pl.BlockSpec((batch_tile, width), lambda i: (i, 0))

    def weight_spec(shape):
        # constant index map -> weights stay resident in VMEM across grid steps
        return pl.BlockSpec(shape, lambda i: (0, 0))

    in_specs = ([batch_spec(in_p), batch_spec(tp)]
                + [weight_spec(w.shape) for w in fused_params])
    out_specs = (batch_spec(tp), batch_spec(tp))

    return pl.pallas_call(
        _coupling_kernel,
        out_shape=(jax.ShapeDtypeStruct((Bp, tp), jnp.float32),
                   jax.ShapeDtypeStruct((Bp, tp), jnp.float32)),
        grid=grid,
        in_specs=in_specs,
        out_specs=out_specs,
        compiler_params=pltpu.CompilerParams(
            dimension_semantics=("parallel",)),
    )(net_in_p, x_trans_p, *fused_params)


# ----------------------------------------------------------------------------
# Parameter construction (deterministic, nn.Linear-style init)
# ----------------------------------------------------------------------------
def _linear_init(key, fan_in, fan_out):
    kw, kb = jax.random.split(key)
    bound = 1.0 / np.sqrt(fan_in)
    w = jax.random.uniform(kw, (fan_in, fan_out), jnp.float32, -bound, bound)
    b = jax.random.uniform(kb, (1, fan_out), jnp.float32, -bound, bound)
    return w, b


def make_residual_mlp_params(key, in_dim, out_dim, hidden_dim=32):
    k0, k1, k2, k3 = jax.random.split(key, 4)
    wi, bi = _linear_init(k0, in_dim, hidden_dim)
    w1, b1 = _linear_init(k1, hidden_dim, hidden_dim)
    w2, b2 = _linear_init(k2, hidden_dim, hidden_dim)
    wo, bo = _linear_init(k3, hidden_dim, out_dim)
    return (wi, bi, w1, b1, w2, b2, wo, bo)


def _fuse_and_pad(scale_p, translate_p, in_dim, hidden, out_dim):
    """Fuse scale/translate MLPs into one block-diagonal MLP, zero-padded to
    128-multiple lane widths.  Done once at init, on host."""
    in_p = _round_up(max(in_dim, 1), 128)
    h2 = 2 * hidden
    h2_p = _round_up(h2, 128)
    tp = _round_up(max(out_dim, 1), 128)

    s_wi, s_bi, s_w1, s_b1, s_w2, s_b2, s_wo, s_bo = [np.asarray(p) for p in scale_p]
    t_wi, t_bi, t_w1, t_b1, t_w2, t_b2, t_wo, t_bo = [np.asarray(p) for p in translate_p]

    wi = np.zeros((in_p, h2_p), np.float32)
    wi[:in_dim, :hidden] = s_wi
    wi[:in_dim, hidden:h2] = t_wi
    bi = np.zeros((1, h2_p), np.float32)
    bi[0, :hidden] = s_bi[0]
    bi[0, hidden:h2] = t_bi[0]

    def blkdiag(sw, tw):
        w = np.zeros((h2_p, h2_p), np.float32)
        w[:hidden, :hidden] = sw
        w[hidden:h2, hidden:h2] = tw
        return w

    def cat_bias(sb, tb):
        b = np.zeros((1, h2_p), np.float32)
        b[0, :hidden] = sb[0]
        b[0, hidden:h2] = tb[0]
        return b

    w1 = blkdiag(s_w1, t_w1); b1 = cat_bias(s_b1, t_b1)
    w2 = blkdiag(s_w2, t_w2); b2 = cat_bias(s_b2, t_b2)

    # output: s in lanes [0, tp), t in lanes [tp, 2*tp)  (both vreg-aligned)
    wo = np.zeros((h2_p, 2 * tp), np.float32)
    wo[:hidden, :out_dim] = s_wo
    wo[hidden:h2, tp:tp + out_dim] = t_wo
    bo = np.zeros((1, 2 * tp), np.float32)
    bo[0, :out_dim] = s_bo[0]
    bo[0, tp:tp + out_dim] = t_bo[0]

    fused = tuple(jnp.asarray(a) for a in (wi, bi, w1, b1, w2, b2, wo, bo))
    return fused, in_p, tp


# ----------------------------------------------------------------------------
# RealNVPCoupling forward (glue in JAX, compute in Pallas)
# ----------------------------------------------------------------------------
class RealNVPCouplingPallas:
    def __init__(self, mask, cond_dim=0, hidden_dim=32, key=None, batch_tile=512):
        mask = np.asarray(mask, dtype=bool)
        assert mask.ndim == 1, "mask must be 1D"
        self.mask = mask
        self.pass_idx = np.where(mask)[0]
        self.trans_idx = np.where(~mask)[0]
        self.pass_dim = int(mask.sum())
        self.trans_dim = int(mask.size - self.pass_dim)
        self.cond_dim = int(cond_dim or 0)
        self.hidden_dim = int(hidden_dim)
        self.batch_tile = int(batch_tile)
        net_in_dim = self.pass_dim + self.cond_dim

        # single static inverse-permutation gather instead of gather + scatter
        perm = np.concatenate([self.pass_idx, self.trans_idx])
        self.inv_perm = np.argsort(perm)

        ks, kt = jax.random.split(key, 2)
        self.scale_params = make_residual_mlp_params(ks, net_in_dim,
                                                     self.trans_dim, hidden_dim)
        self.translate_params = make_residual_mlp_params(kt, net_in_dim,
                                                         self.trans_dim, hidden_dim)
        self.fused_params, self.in_pad, self.trans_pad = _fuse_and_pad(
            self.scale_params, self.translate_params,
            net_in_dim, hidden_dim, self.trans_dim)

    def forward(self, x, cond=None):
        B = x.shape[0]
        x_pass = x[:, self.pass_idx]                              # x[:, mask]   (static gather)
        x_trans = x[:, self.trans_idx]                            # x[:, ~mask]  (static gather)
        net_in = (jnp.concatenate([x_pass, cond], axis=1)
                  if cond is not None else x_pass)

        tb = min(self.batch_tile, _round_up(B, 8))
        b_pad = _round_up(B, tb)

        # zero-pad batch + lanes (padded lanes give s=0, t=0 -> exact no-ops)
        net_in_p = jnp.zeros((b_pad, self.in_pad), jnp.float32)
        net_in_p = net_in_p.at[:B, :net_in.shape[1]].set(net_in.astype(jnp.float32))
        x_trans_p = jnp.zeros((b_pad, self.trans_pad), jnp.float32)
        x_trans_p = x_trans_p.at[:B, :self.trans_dim].set(x_trans.astype(jnp.float32))

        y_trans_p, s_p = _coupling_pallas(net_in_p, x_trans_p,
                                          self.fused_params, batch_tile=tb)

        y_trans = y_trans_p[:B, :self.trans_dim]
        log_det = jnp.sum(s_p[:B, :self.trans_dim], axis=1)

        combined = jnp.concatenate([x_pass, y_trans], axis=1)     # permuted order
        y = combined[:, self.inv_perm]                            # back to original layout
        return y, log_det

    # TODO(synk): inverse() pass of the coupling layer not implemented (forward only).

    # pure-JAX reference for verification (unfused, unpadded weights)
    def forward_ref(self, x, cond=None):
        def mlp(xin, p):
            wi, bi, w1, b1, w2, b2, wo, bo = p
            h = jnp.maximum(xin @ wi + bi, 0.0)
            h = h + jnp.maximum(h @ w1 + b1, 0.0)
            h = h + jnp.maximum(h @ w2 + b2, 0.0)
            return h @ wo + bo
        x_pass = x[:, self.pass_idx]
        x_trans = x[:, self.trans_idx]
        net_in = (jnp.concatenate([x_pass, cond], axis=1)
                  if cond is not None else x_pass)
        s = mlp(net_in, self.scale_params)
        t = mlp(net_in, self.translate_params)
        y_trans = x_trans * jnp.exp(s) + t
        y = x.at[:, self.trans_idx].set(y_trans)
        return y, jnp.sum(s, axis=1)


# ----------------------------------------------------------------------------
if __name__ == "__main__":
    key = jax.random.PRNGKey(0)
    k_param, k_x, k_c = jax.random.split(key, 3)

    B, D, COND = 8, 16, 4
    mask = np.arange(D) % 2 == 0                                  # alternating mask

    module = RealNVPCouplingPallas(mask, cond_dim=COND, hidden_dim=32, key=k_param)

    x = jax.random.normal(k_x, (B, D), jnp.float32)
    cond = jax.random.normal(k_c, (B, COND), jnp.float32)

    y, log_det = module.forward(x, cond)
    y = jax.block_until_ready(y)
    log_det = jax.block_until_ready(log_det)

    y_ref, ld_ref = module.forward_ref(x, cond)
    np.testing.assert_allclose(np.asarray(y), np.asarray(y_ref), rtol=1e-5, atol=1e-5)
    np.testing.assert_allclose(np.asarray(log_det), np.asarray(ld_ref), rtol=1e-5, atol=1e-5)

    print("KERNEL_OK")
</pallas_src>

<mosaic_0001>
module attributes {stable_mosaic.version = 11 : i64} {
  func.func @_coupling_kernel(%arg0: i32, %arg1: memref<8x128xf32, #tpu.memory_space<vmem>>, %arg2: memref<8x128xf32, #tpu.memory_space<vmem>>, %arg3: memref<128x128xf32, #tpu.memory_space<vmem>>, %arg4: memref<1x128xf32, #tpu.memory_space<vmem>>, %arg5: memref<128x128xf32, #tpu.memory_space<vmem>>, %arg6: memref<1x128xf32, #tpu.memory_space<vmem>>, %arg7: memref<128x128xf32, #tpu.memory_space<vmem>>, %arg8: memref<1x128xf32, #tpu.memory_space<vmem>>, %arg9: memref<128x256xf32, #tpu.memory_space<vmem>>, %arg10: memref<1x256xf32, #tpu.memory_space<vmem>>, %arg11: memref<8x128xf32, #tpu.memory_space<vmem>>, %arg12: memref<8x128xf32, #tpu.memory_space<vmem>>) attributes {dimension_semantics = [#tpu.dimension_semantics<parallel>], iteration_bounds = array<i64: 1>, scalar_prefetch = 0 : i64, scratch_operands = 0 : i64, tpu.core_type = #tpu.core_type<tc>, window_params = [{transform_indices = @transform_0, window_bounds = array<i64: 8, 128>}, {transform_indices = @transform_1, window_bounds = array<i64: 8, 128>}, {pipeline_mode = #tpu.pipeline_mode<synchronous>, transform_indices = @transform_2, window_bounds = array<i64: 128, 128>}, {pipeline_mode = #tpu.pipeline_mode<synchronous>, transform_indices = @transform_3, window_bounds = array<i64: 1, 128>}, {pipeline_mode = #tpu.pipeline_mode<synchronous>, transform_indices = @transform_4, window_bounds = array<i64: 128, 128>}, {pipeline_mode = #tpu.pipeline_mode<synchronous>, transform_indices = @transform_5, window_bounds = array<i64: 1, 128>}, {pipeline_mode = #tpu.pipeline_mode<synchronous>, transform_indices = @transform_6, window_bounds = array<i64: 128, 128>}, {pipeline_mode = #tpu.pipeline_mode<synchronous>, transform_indices = @transform_7, window_bounds = array<i64: 1, 128>}, {pipeline_mode = #tpu.pipeline_mode<synchronous>, transform_indices = @transform_8, window_bounds = array<i64: 128, 256>}, {pipeline_mode = #tpu.pipeline_mode<synchronous>, transform_indices = @transform_9, window_bounds = array<i64: 1, 256>}, {transform_indices = @transform_10, window_bounds = array<i64: 8, 128>}, {transform_indices = @transform_11, window_bounds = array<i64: 8, 128>}]} {
    %c0 = arith.constant 0 : index
    %c0_0 = arith.constant 0 : index
    %0 = vector.load %arg1[%c0, %c0_0] : memref<8x128xf32, #tpu.memory_space<vmem>>, vector<8x128xf32>
    %c0_1 = arith.constant 0 : index
    %c0_2 = arith.constant 0 : index
    %1 = vector.load %arg3[%c0_1, %c0_2] : memref<128x128xf32, #tpu.memory_space<vmem>>, vector<128x128xf32>
    %cst = arith.constant dense<0.000000e+00> : vector<8x128xf32>
    %2 = tpu.matmul %0, %1, %cst {dimension_numbers = #tpu.dot_dimension_numbers<[1], [0], [0], [1], [0, 0, 1, 1], [], []>} : vector<8x128xf32>, vector<128x128xf32>, vector<8x128xf32> -> vector<8x128xf32>
    %c0_3 = arith.constant 0 : index
    %c0_4 = arith.constant 0 : index
    %3 = vector.load %arg4[%c0_3, %c0_4] : memref<1x128xf32, #tpu.memory_space<vmem>>, vector<1x128xf32>
    %4 = vector.broadcast %3 : vector<1x128xf32> to vector<8x128xf32>
    %5 = arith.addf %2, %4 : vector<8x128xf32>
    %cst_5 = arith.constant 0.000000e+00 : f32
    %6 = vector.broadcast %cst_5 : f32 to vector<8x128xf32>
    %7 = arith.maximumf %5, %6 : vector<8x128xf32>
    %c0_6 = arith.constant 0 : index
    %c0_7 = arith.constant 0 : index
    %8 = vector.load %arg5[%c0_6, %c0_7] : memref<128x128xf32, #tpu.memory_space<vmem>>, vector<128x128xf32>
    %cst_8 = arith.constant dense<0.000000e+00> : vector<8x128xf32>
    %9 = tpu.matmul %7, %8, %cst_8 {dimension_numbers = #tpu.dot_dimension_numbers<[1], [0], [0], [1], [0, 0, 1, 1], [], []>} : vector<8x128xf32>, vector<128x128xf32>, vector<8x128xf32> -> vector<8x128xf32>
    %c0_9 = arith.constant 0 : index
    %c0_10 = arith.constant 0 : index
    %10 = vector.load %arg6[%c0_9, %c0_10] : memref<1x128xf32, #tpu.memory_space<vmem>>, vector<1x128xf32>
    %11 = vector.broadcast %10 : vector<1x128xf32> to vector<8x128xf32>
    %12 = arith.addf %9, %11 : vector<8x128xf32>
    %cst_11 = arith.constant 0.000000e+00 : f32
    %13 = vector.broadcast %cst_11 : f32 to vector<8x128xf32>
    %14 = arith.maximumf %12, %13 : vector<8x128xf32>
    %15 = arith.addf %7, %14 : vector<8x128xf32>
    %c0_12 = arith.constant 0 : index
    %c0_13 = arith.constant 0 : index
    %16 = vector.load %arg7[%c0_12, %c0_13] : memref<128x128xf32, #tpu.memory_space<vmem>>, vector<128x128xf32>
    %cst_14 = arith.constant dense<0.000000e+00> : vector<8x128xf32>
    %17 = tpu.matmul %15, %16, %cst_14 {dimension_numbers = #tpu.dot_dimension_numbers<[1], [0], [0], [1], [0, 0, 1, 1], [], []>} : vector<8x128xf32>, vector<128x128xf32>, vector<8x128xf32> -> vector<8x128xf32>
    %c0_15 = arith.constant 0 : index
    %c0_16 = arith.constant 0 : index
    %18 = vector.load %arg8[%c0_15, %c0_16] : memref<1x128xf32, #tpu.memory_space<vmem>>, vector<1x128xf32>
    %19 = vector.broadcast %18 : vector<1x128xf32> to vector<8x128xf32>
    %20 = arith.addf %17, %19 : vector<8x128xf32>
    %cst_17 = arith.constant 0.000000e+00 : f32
    %21 = vector.broadcast %cst_17 : f32 to vector<8x128xf32>
    %22 = arith.maximumf %20, %21 : vector<8x128xf32>
    %23 = arith.addf %15, %22 : vector<8x128xf32>
    %c0_18 = arith.constant 0 : index
    %c0_19 = arith.constant 0 : index
    %24 = vector.load %arg9[%c0_18, %c0_19] : memref<128x256xf32, #tpu.memory_space<vmem>>, vector<128x256xf32>
    %cst_20 = arith.constant dense<0.000000e+00> : vector<8x256xf32>
    %25 = tpu.matmul %23, %24, %cst_20 {dimension_numbers = #tpu.dot_dimension_numbers<[1], [0], [0], [1], [0, 0, 1, 1], [], []>} : vector<8x128xf32>, vector<128x256xf32>, vector<8x256xf32> -> vector<8x256xf32>
    %c0_21 = arith.constant 0 : index
    %c0_22 = arith.constant 0 : index
    %26 = vector.load %arg10[%c0_21, %c0_22] : memref<1x256xf32, #tpu.memory_space<vmem>>, vector<1x256xf32>
    %27 = vector.broadcast %26 : vector<1x256xf32> to vector<8x256xf32>
    %28 = arith.addf %25, %27 : vector<8x256xf32>
    %29 = vector.extract_strided_slice %28 {offsets = [0, 0], sizes = [8, 128], strides = [1, 1]} : vector<8x256xf32> to vector<8x128xf32>
    %30 = vector.extract_strided_slice %28 {offsets = [0, 128], sizes = [8, 128], strides = [1, 1]} : vector<8x256xf32> to vector<8x128xf32>
    %c0_23 = arith.constant 0 : index
    %c0_24 = arith.constant 0 : index
    %31 = vector.load %arg2[%c0_23, %c0_24] : memref<8x128xf32, #tpu.memory_space<vmem>>, vector<8x128xf32>
    %32 = math.exp %29 : vector<8x128xf32>
    %33 = arith.mulf %31, %32 : vector<8x128xf32>
    %34 = arith.addf %33, %30 : vector<8x128xf32>
    %c0_25 = arith.constant 0 : index
    %c0_26 = arith.constant 0 : index
    %35 = vector.load %arg11[%c0_25, %c0_26] : memref<8x128xf32, #tpu.memory_space<vmem>>, vector<8x128xf32>
    tpu.vector_store %arg11[%c0_25, %c0_26], %34 {strides = array<i32>} : memref<8x128xf32, #tpu.memory_space<vmem>>, vector<8x128xf32>,
    %c0_27 = arith.constant 0 : index
    %c0_28 = arith.constant 0 : index
    %36 = vector.load %arg12[%c0_27, %c0_28] : memref<8x128xf32, #tpu.memory_space<vmem>>, vector<8x128xf32>
    tpu.vector_store %arg12[%c0_27, %c0_28], %29 {strides = array<i32>} : memref<8x128xf32, #tpu.memory_space<vmem>>, vector<8x128xf32>,
    return
  }
  func.func @transform_0(%arg0: i32) -> (i32, i32) {
    %c0_i32 = arith.constant 0 : i32
    %c0_i32_0 = arith.constant 0 : i32
    return %arg0, %c0_i32 : i32, i32
  }
  func.func @transform_1(%arg0: i32) -> (i32, i32) {
    %c0_i32 = arith.constant 0 : i32
    %c0_i32_0 = arith.constant 0 : i32
    return %arg0, %c0_i32 : i32, i32
  }
  func.func @transform_2(%arg0: i32) -> (i32, i32) {
    %c0_i32 = arith.constant 0 : i32
    %c0_i32_0 = arith.constant 0 : i32
    %c0_i32_1 = arith.constant 0 : i32
    return %c0_i32, %c0_i32_0 : i32, i32
  }
  func.func @transform_3(%arg0: i32) -> (i32, i32) {
    %c0_i32 = arith.constant 0 : i32
    %c0_i32_0 = arith.constant 0 : i32
    %c0_i32_1 = arith.constant 0 : i32
    return %c0_i32, %c0_i32_0 : i32, i32
  }
  func.func @transform_4(%arg0: i32) -> (i32, i32) {
    %c0_i32 = arith.constant 0 : i32
    %c0_i32_0 = arith.constant 0 : i32
    %c0_i32_1 = arith.constant 0 : i32
    return %c0_i32, %c0_i32_0 : i32, i32
  }
  func.func @transform_5(%arg0: i32) -> (i32, i32) {
    %c0_i32 = arith.constant 0 : i32
    %c0_i32_0 = arith.constant 0 : i32
    %c0_i32_1 = arith.constant 0 : i32
    return %c0_i32, %c0_i32_0 : i32, i32
  }
  func.func @transform_6(%arg0: i32) -> (i32, i32) {
    %c0_i32 = arith.constant 0 : i32
    %c0_i32_0 = arith.constant 0 : i32
    %c0_i32_1 = arith.constant 0 : i32
    return %c0_i32, %c0_i32_0 : i32, i32
  }
  func.func @transform_7(%arg0: i32) -> (i32, i32) {
    %c0_i32 = arith.constant 0 : i32
    %c0_i32_0 = arith.constant 0 : i32
    %c0_i32_1 = arith.constant 0 : i32
    return %c0_i32, %c0_i32_0 : i32, i32
  }
  func.func @transform_8(%arg0: i32) -> (i32, i32) {
    %c0_i32 = arith.constant 0 : i32
    %c0_i32_0 = arith.constant 0 : i32
    %c0_i32_1 = arith.constant 0 : i32
    return %c0_i32, %c0_i32_0 : i32, i32
  }
  func.func @transform_9(%arg0: i32) -> (i32, i32) {
    %c0_i32 = arith.constant 0 : i32
    %c0_i32_0 = arith.constant 0 : i32
    %c0_i32_1 = arith.constant 0 : i32
    return %c0_i32, %c0_i32_0 : i32, i32
  }
  func.func @transform_10(%arg0: i32) -> (i32, i32) {
    %c0_i32 = arith.constant 0 : i32
    %c0_i32_0 = arith.constant 0 : i32
    return %arg0, %c0_i32 : i32, i32
  }
  func.func @transform_11(%arg0: i32) -> (i32, i32) {
    %c0_i32 = arith.constant 0 : i32
    %c0_i32_0 = arith.constant 0 : i32
    return %arg0, %c0_i32 : i32, i32
  }
}

</mosaic_0001>

<bundles_post_ra>
// kernel: tpu_custom_call.1
= control target key start
LH: loop header
LB: loop body
LE: loop exit
PB: predicated region body
PF: predicated region fallthrough
CT: control target
= control target key end

     0   :  { %17 = vsyncpa [#allocation3], 0  ;;  %s708_s0 = inlined_call_operand.hbm [shape: f32[8,128], index: 0, kind: input, shape index: {}]   ;;  %s709_s1 = inlined_call_operand.hbm [shape: f32[8,128], index: 1, kind: input, shape index: {}]   ;;  %s710_s2 = inlined_call_operand.hbm [shape: f32[128,128], index: 2, kind: input, shape index: {}]   ;;  %s711_s3 = inlined_call_operand.vmem [shape: f32[1,128], index: 3, kind: input, shape index: {}]   ;;  %s712_s4 = inlined_call_operand.hbm [shape: f32[128,128], index: 4, kind: input, shape index: {}]   ;;  %s713_s5 = inlined_call_operand.vmem [shape: f32[1,128], index: 5, kind: input, shape index: {}]   ;;  %s714_s6 = inlined_call_operand.hbm [shape: f32[128,128], index: 6, kind: input, shape index: {}]   ;;  %s715_s7 = inlined_call_operand.vmem [shape: f32[1,128], index: 7, kind: input, shape index: {}]   ;;  %s716_s8 = inlined_call_operand.hbm [shape: f32[128,256], index: 8, kind: input, shape index: {}]   ;;  %s717_s9 = inlined_call_operand.vmem [shape: f32[1,256], index: 9, kind: input, shape index: {}]   ;;  %s718_s10 = inlined_call_operand.hbm [shape: f32[8,128], index: 10, kind: output, shape index: {0}]   ;;  %s719_s11 = inlined_call_operand.hbm [shape: f32[8,128], index: 11, kind: output, shape index: {1}]  }
   0x1   :  { %18 = vsyncpa [#allocation6], 0 }
   0x2   :  { %19 = vsyncpa [#allocation9], 0 }
   0x3   :  { %20 = vsyncpa [#allocation12], 0 }
   0x4   :  { %21 = vsyncpa [#allocation4], 0  ;;  %s39_s19 = sshll.u32 %s709_s1, 4  ;;  %s40_s19 = int_to_ptr.hbm [resolvable:$true] %s39_s19 }
   0x5   :  { %22 = vsyncpa [#allocation15], 0  ;;  %s597_s20 = smov [#allocation5]   ;;  %s64_s24 = sshll.u32 %s712_s4, 4  ;;  %s65_s24 = int_to_ptr.hbm [resolvable:$true] %s64_s24 }
   0x6   :  { %s41_s21 = sshll.u32 %s597_s20, 4  ;;  %s598_s25 = smov [#allocation8]   ;;  %s42_s21 = int_to_ptr.vmem [resolvable:$true] %s41_s21 }
   0x7   :  { %44 = dma.hbm_to_vmem [thread:$0]  %s40_s19, 128, %s42_s21, [#allocation6]  }
   0x8   :  { %s66_s26 = sshll.u32 %s598_s25, 4  ;;  %s28_s29 = sshll.u32 %s708_s0, 4  ;;  %s67_s26 = int_to_ptr.vmem [resolvable:$true] %s66_s26  ;;  %s29_s29 = int_to_ptr.hbm [resolvable:$true] %s28_s29 }
   0x9   :  { %s599_s1 = smov 128   ;;  %s600_s30 = smov 8  }
   0xa   :  { %72 = dma.hbm_to_vmem [thread:$0]  %s65_s24, 2048, %s67_s26, [#allocation9], %s599_s1, %s599_s1, %s600_s30  }
   0xb   :  { %s49_s14 = sshll.u32 %s710_s2, 4  ;;  %s601_s15 = smov [#allocation2]   ;;  %s50_s14 = int_to_ptr.hbm [resolvable:$true] %s49_s14 }
   0xc   :  { %s30_s16 = sshll.u32 %s601_s15, 4  ;;  %s602_s4 = smov [#allocation7]   ;;  %s31_s16 = int_to_ptr.vmem [resolvable:$true] %s30_s16 }
   0xd   :  { %33 = dma.hbm_to_vmem [thread:$0]  %s29_s29, 128, %s31_s16, [#allocation3]  }
   0xe   :  { %s51_s17 = sshll.u32 %s602_s4, 4  ;;  %s79_s0 = sshll.u32 %s714_s6, 4  ;;  %s52_s17 = int_to_ptr.vmem [resolvable:$true] %s51_s17  ;;  %s80_s0 = int_to_ptr.hbm [resolvable:$true] %s79_s0 }
   0xf   :  { %57 = dma.hbm_to_vmem [thread:$0]  %s50_s14, 2048, %s52_s17, [#allocation6], %s599_s1, %s599_s1, %s600_s30  }
  0x10   :  { %s94_s22 = sshll.u32 %s716_s8, 4  ;;  %s603_s23 = smov [#allocation10]   ;;  %s95_s22 = int_to_ptr.hbm [resolvable:$true] %s94_s22 }
  0x11   :  { %s81_s2 = sshll.u32 %s603_s23, 4  ;;  %s604_s24 = smov [#allocation11]   ;;  %s82_s2 = int_to_ptr.vmem [resolvable:$true] %s81_s2 }
  0x12   :  { %87 = dma.hbm_to_vmem [thread:$0]  %s80_s0, 2048, %s82_s2, [#allocation9], %s599_s1, %s599_s1, %s600_s30  }
  0x13   :  { %s96_s25 = sshll.u32 %s604_s24, 4  ;;  %s605_s26 = smov 256   ;;  %s97_s25 = int_to_ptr.vmem [resolvable:$true] %s96_s25 }
  0x14   :  { %s606_s27 = smov 16  }
  0x15   :  { %102 = dma.hbm_to_vmem [thread:$0]  %s95_s22, 4096, %s97_s25, [#allocation12], %s605_s26, %s605_s26, %s606_s27  }
  0x16   :  { %585 = dma.done.wait [#allocation3], 128  }
  0x17   :  { %586 = vsyncadd [#allocation3], 4294967168 }
  0x18   :  { %587 = dma.done.wait [#allocation6], 2176  }
  0x19   :  { %588 = vsyncadd [#allocation6], 4294965120 }
  0x1a   :  { %589 = dma.done.wait [#allocation9], 4096  }
  0x1b   :  { %590 = vsyncadd [#allocation9], 4294963200 }
  0x1c   :  { %591 = dma.done.wait [#allocation12], 4096  }
  0x1d   :  { %592 = vsyncadd [#allocation12], 4294963200  ;;  %v145_v0 = vld [vmem:[#allocation7 + $0x78] sm:$0xff]  ;;  %v144_v1 = vld [vmem:[#allocation7 + $0x70] sm:$0xff]  ;;  %s607_s12 = smov [#allocation14]   ;;  %s358_s16 = sshll.u32 %s719_s11, 4  ;;  %s359_s16 = int_to_ptr.hbm [resolvable:$true] %s358_s16 }
  0x1e   :  { %150 = vmatpush.msra.mxu0 %v145_v0  ;;  %v143_v2 = vld [vmem:[#allocation7 + $0x68] sm:$0xff]  ;;  %v142_v3 = vld [vmem:[#allocation7 + $0x60] sm:$0xff]  ;;  %v186_v4 = vld [vmem:[#allocation8 + $0x78] sm:$0xff]  ;;  %s356_s13 = sshll.u32 %s607_s12, 4  ;;  %s347_s18 = sshll.u32 %s718_s10, 4  ;;  %s357_s13 = int_to_ptr.vmem [resolvable:$true] %s356_s13  ;;  %s348_s18 = int_to_ptr.hbm [resolvable:$true] %s347_s18 }
  0x1f   :  { %v141_v5 = vld [vmem:[#allocation7 + $0x58] sm:$0xff]  ;;  %191 = vmatpush.msra.mxu1 %v186_v4  ;;  %v185_v6 = vld [vmem:[#allocation8 + $0x70] sm:$0xff]  ;;  %v184_v7 = vld [vmem:[#allocation8 + $0x68] sm:$0xff] }
  0x20   :  { %151 = vmatpush.msra.mxu0 %v144_v1  ;;  %v140_v8 = vld [vmem:[#allocation7 + $0x50] sm:$0xff]  ;;  %v183_v9 = vld [vmem:[#allocation8 + $0x60] sm:$0xff]  ;;  %v139_v10 = vld [vmem:[#allocation7 + $0x48] sm:$0xff] }
  0x21   :  { %192 = vmatpush.msra.mxu1 %v185_v6  ;;  %v182_v11 = vld [vmem:[#allocation8 + $0x58] sm:$0xff]  ;;  %v138_v12 = vld [vmem:[#allocation7 + $0x40] sm:$0xff]  ;;  %v181_v13 = vld [vmem:[#allocation8 + $0x50] sm:$0xff] }
  0x22   :  { %152 = vmatpush.msra.mxu0 %v143_v2  ;;  %v137_v14 = vld [vmem:[#allocation7 + $0x38] sm:$0xff]  ;;  %v180_v15 = vld [vmem:[#allocation8 + $0x48] sm:$0xff]  ;;  %v136_v16 = vld [vmem:[#allocation7 + $0x30] sm:$0xff] }
  0x23   :  { %193 = vmatpush.msra.mxu1 %v184_v7  ;;  %v179_v17 = vld [vmem:[#allocation8 + $0x40] sm:$0xff]  ;;  %v135_v18 = vld [vmem:[#allocation7 + $0x28] sm:$0xff]  ;;  %v178_v19 = vld [vmem:[#allocation8 + $0x38] sm:$0xff] }
  0x24   :  { %153 = vmatpush.msra.mxu0 %v142_v3  ;;  %v134_v20 = vld [vmem:[#allocation7 + $0x20] sm:$0xff]  ;;  %v177_v21 = vld [vmem:[#allocation8 + $0x30] sm:$0xff]  ;;  %v133_v22 = vld [vmem:[#allocation7 + $0x18] sm:$0xff] }
  0x25   :  { %194 = vmatpush.msra.mxu1 %v183_v9  ;;  %v176_v23 = vld [vmem:[#allocation8 + $0x28] sm:$0xff]  ;;  %v132_v24 = vld [vmem:[#allocation7 + $0x10] sm:$0xff]  ;;  %v175_v25 = vld [vmem:[#allocation8 + $0x20] sm:$0xff] }
  0x26   :  { %154 = vmatpush.msra.mxu0 %v141_v5  ;;  %v131_v26 = vld [vmem:[#allocation7 + $0x8] sm:$0xff]  ;;  %v174_v27 = vld [vmem:[#allocation8 + $0x18] sm:$0xff]  ;;  %v130_v28 = vld [vmem:[#allocation7] sm:$0xff] }
  0x27   :  { %195 = vmatpush.msra.mxu1 %v182_v11  ;;  %v129_v29 = vld [vmem:[#allocation2] sm:$0xff]  ;;  %v172_v31 = vld [vmem:[#allocation8 + $0x8] sm:$0xff]  ;;  %v171_v32 = vld [vmem:[#allocation8] sm:$0xff] }
  0x28   :  { %155 = vmatpush.msra.mxu0 %v140_v8  ;;  %v173_v30 = vld [vmem:[#allocation8 + $0x10] sm:$0xff]  ;;  %v228_v33 = vld [vmem:[#allocation10 + $0x78] sm:$0xff]  ;;  %v226_v35 = vld [vmem:[#allocation10 + $0x68] sm:$0xff] }
  0x29   :  { %196 = vmatpush.msra.mxu1 %v181_v13  ;;  %v227_v34 = vld [vmem:[#allocation10 + $0x70] sm:$0xff]  ;;  %233 = vmatpush.msra.mxu2 %v228_v33  ;;  %v225_v36 = vld [vmem:[#allocation10 + $0x60] sm:$0xff]  ;;  %v224_v37 = vld [vmem:[#allocation10 + $0x58] sm:$0xff] }
  0x2a   :  { %156 = vmatpush.msra.mxu0 %v139_v10  ;;  %v223_v38 = vld [vmem:[#allocation10 + $0x50] sm:$0xff]  ;;  %v222_v39 = vld [vmem:[#allocation10 + $0x48] sm:$0xff]  ;;  %v221_v40 = vld [vmem:[#allocation10 + $0x40] sm:$0xff] }
  0x2b   :  { %197 = vmatpush.msra.mxu1 %v180_v15  ;;  %234 = vmatpush.msra.mxu2 %v227_v34  ;;  %v220_v41 = vld [vmem:[#allocation10 + $0x38] sm:$0xff]  ;;  %v219_v42 = vld [vmem:[#allocation10 + $0x30] sm:$0xff]  ;;  %v218_v43 = vld [vmem:[#allocation10 + $0x28] sm:$0xff] }
  0x2c   :  { %157 = vmatpush.msra.mxu0 %v138_v12  ;;  %v217_v44 = vld [vmem:[#allocation10 + $0x20] sm:$0xff]  ;;  %v388_v45 = vld [vmem:[%s711_s3] ss:$0 sm:$0xff]  ;;  %v216_v49 = vld [vmem:[#allocation10 + $0x18] sm:$0xff] }
  0x2d   :  { %198 = vmatpush.msra.mxu1 %v179_v17  ;;  %235 = vmatpush.msra.mxu2 %v226_v35  ;;  %v215_v50 = vld [vmem:[#allocation10 + $0x10] sm:$0xff]  ;;  %v214_v51 = vld [vmem:[#allocation10 + $0x8] sm:$0xff]  ;;  %v213_v52 = vld [vmem:[#allocation10] sm:$0xff] }
  0x2e   :  { %158 = vmatpush.msra.mxu0 %v137_v14  ;;  %v285_v53 = vld [vmem:[#allocation11 + $0xf0] sm:$0xff]  ;;  %v286_v54 = vld [vmem:[#allocation11 + $0xf8] sm:$0xff]  ;;  %v283_v55 = vld [vmem:[#allocation11 + $0xe0] sm:$0xff] }
  0x2f   :  { %199 = vmatpush.msra.mxu1 %v178_v19  ;;  %236 = vmatpush.msra.mxu2 %v225_v36  ;;  %v284_v56 = vld [vmem:[#allocation11 + $0xe8] sm:$0xff]  ;;  %v281_v57 = vld [vmem:[#allocation11 + $0xd0] sm:$0xff]  ;;  %v282_v58 = vld [vmem:[#allocation11 + $0xd8] sm:$0xff] }
  0x30   :  { %159 = vmatpush.msra.mxu0 %v136_v16  ;;  %293 = vmatpush.msra.mxu3 %v285_v53  ;;  %v279_v59 = vld [vmem:[#allocation11 + $0xc0] sm:$0xff]  ;;  %v280_v60 = vld [vmem:[#allocation11 + $0xc8] sm:$0xff]  ;;  %v277_v61 = vld [vmem:[#allocation11 + $0xb0] sm:$0xff] }
  0x31   :  { %200 = vmatpush.msra.mxu1 %v177_v21  ;;  %237 = vmatpush.msra.mxu2 %v224_v37  ;;  %v278_v62 = vld [vmem:[#allocation11 + $0xb8] sm:$0xff]  ;;  %v275_v63 = vld [vmem:[#allocation11 + $0xa0] sm:$0xff]  ;;  %v276_v0 = vld [vmem:[#allocation11 + $0xa8] sm:$0xff] }
  0x32   :  { %160 = vmatpush.msra.mxu0 %v135_v18  ;;  %294 = vmatpush.msra.mxu3 %v283_v55  ;;  %v273_v1 = vld [vmem:[#allocation11 + $0x90] sm:$0xff]  ;;  %v274_v2 = vld [vmem:[#allocation11 + $0x98] sm:$0xff]  ;;  %v271_v3 = vld [vmem:[#allocation11 + $0x80] sm:$0xff] }
  0x33   :  { %201 = vmatpush.msra.mxu1 %v176_v23  ;;  %238 = vmatpush.msra.mxu2 %v223_v38  ;;  %v272_v4 = vld [vmem:[#allocation11 + $0x88] sm:$0xff]  ;;  %v269_v5 = vld [vmem:[#allocation11 + $0x70] sm:$0xff]  ;;  %v270_v6 = vld [vmem:[#allocation11 + $0x78] sm:$0xff] }
  0x34   :  { %161 = vmatpush.msra.mxu0 %v134_v20  ;;  %295 = vmatpush.msra.mxu3 %v281_v57  ;;  %v267_v7 = vld [vmem:[#allocation11 + $0x60] sm:$0xff]  ;;  %v268_v8 = vld [vmem:[#allocation11 + $0x68] sm:$0xff]  ;;  %v265_v9 = vld [vmem:[#allocation11 + $0x50] sm:$0xff] }
  0x35   :  { %202 = vmatpush.msra.mxu1 %v175_v25  ;;  %239 = vmatpush.msra.mxu2 %v222_v39  ;;  %v266_v10 = vld [vmem:[#allocation11 + $0x58] sm:$0xff]  ;;  %v263_v11 = vld [vmem:[#allocation11 + $0x40] sm:$0xff]  ;;  %v264_v12 = vld [vmem:[#allocation11 + $0x48] sm:$0xff] }
  0x36   :  { %162 = vmatpush.msra.mxu0 %v133_v22  ;;  %296 = vmatpush.msra.mxu3 %v279_v59  ;;  %v389_v13 = vld [vmem:[%s713_s5] ss:$0 sm:$0xff]  ;;  %v262_v19 = vld [vmem:[#allocation11 + $0x38] sm:$0xff]  ;;  %v259_v20 = vld [vmem:[#allocation11 + $0x20] sm:$0xff] }
  0x37   :  { %203 = vmatpush.msra.mxu1 %v174_v27  ;;  %240 = vmatpush.msra.mxu2 %v221_v40  ;;  %v261_v18 = vld [vmem:[#allocation11 + $0x30] sm:$0xff]  ;;  %v260_v21 = vld [vmem:[#allocation11 + $0x28] sm:$0xff]  ;;  %v258_v23 = vld [vmem:[#allocation11 + $0x18] sm:$0xff] }
  0x38   :  { %163 = vmatpush.msra.mxu0 %v132_v24  ;;  %297 = vmatpush.msra.mxu3 %v277_v61  ;;  %v257_v22 = vld [vmem:[#allocation11 + $0x10] sm:$0xff]  ;;  %v255_v24 = vld [vmem:[#allocation11] sm:$0xff]  ;;  %v256_v25 = vld [vmem:[#allocation11 + $0x8] sm:$0xff] }
  0x39   :  { %204 = vmatpush.msra.mxu1 %v173_v30  ;;  %241 = vmatpush.msra.mxu2 %v220_v41  ;;  %v333_v38 = vld [vmem:[#allocation5] sm:$0xff] }
  0x3a   :  { %164 = vmatpush.msra.mxu0 %v131_v26  ;;  %298 = vmatpush.msra.mxu3 %v275_v63  ;;  %v390_v26 = vld [vmem:[%s715_s7] ss:$0 sm:$0xff]  ;;  %s608_s7 = smov [#allocation13]  }
  0x3b   :  { %205 = vmatpush.msra.mxu1 %v172_v31  ;;  %242 = vmatpush.msra.mxu2 %v219_v42  ;;  %v287_v31 = vld [vmem:[%s717_s9] sm:$0x3]  ;;  %s345_s9 = sshll.u32 %s608_s7, 4  ;;  %s346_s9 = int_to_ptr.vmem [resolvable:$true] %s345_s9 }
  0x3c   :  { %165 = vmatpush.msra.mxu0 %v130_v28  ;;  %299 = vmatpush.msra.mxu3 %v273_v1  ;;  %v290_v36 = vperm.slane %v287_v31, 1 }
  0x3d   :  { %166 = vmatmul.f32.vlgmr.msra.gmra.mxu0 %v129_v29  ;;  %206 = vmatpush.msra.mxu1 %v171_v32  ;;  %v289_v32 = vperm.slane %v287_v31, 0 }
  0x3e   :  { %243 = vmatpush.msra.mxu2 %v218_v43  ;;  %313 = vmatpush.msrb.mxu0 %v286_v54 }
  0x3f   :  { %300 = vmatpush.msra.mxu3 %v271_v3 }
  0x40   :  { %244 = vmatpush.msra.mxu2 %v217_v44  ;;  %314 = vmatpush.msrb.mxu0 %v284_v56 }
  0x41   :  { %301 = vmatpush.msra.mxu3 %v269_v5 }
  0x42   :  { %245 = vmatpush.msra.mxu2 %v216_v49  ;;  %315 = vmatpush.msrb.mxu0 %v282_v58 }
  0x43   :  { %302 = vmatpush.msra.mxu3 %v267_v7 }
  0x44   :  { %246 = vmatpush.msra.mxu2 %v215_v50  ;;  %316 = vmatpush.msrb.mxu0 %v280_v60 }
  0x45   :  { %303 = vmatpush.msra.mxu3 %v265_v9 }
  0x46   :  { %247 = vmatpush.msra.mxu2 %v214_v51  ;;  %317 = vmatpush.msrb.mxu0 %v278_v62 }
  0x47   :  { %304 = vmatpush.msra.mxu3 %v263_v11 }
  0x48   :  { %248 = vmatpush.msra.mxu2 %v213_v52  ;;  %318 = vmatpush.msrb.mxu0 %v276_v0 }
  0x49   :  { %305 = vmatpush.msra.mxu3 %v261_v18 }
  0x4a   :  { %319 = vmatpush.msrb.mxu0 %v274_v2 }
  0x4b   :  { %306 = vmatpush.msra.mxu3 %v259_v20 }
  0x4c   :  { %320 = vmatpush.msrb.mxu0 %v272_v4 }
  0x4d   :  { %307 = vmatpush.msra.mxu3 %v257_v22 }
  0x4e   :  { %321 = vmatpush.msrb.mxu0 %v270_v6 }
  0x4f   :  { %308 = vmatpush.msra.mxu3 %v255_v24 }
  0x50   :  { %322 = vmatpush.msrb.mxu0 %v268_v8 }
  0x52   :  { %323 = vmatpush.msrb.mxu0 %v266_v10 }
  0x54   :  { %324 = vmatpush.msrb.mxu0 %v264_v12 }
  0x56   :  { %325 = vmatpush.msrb.mxu0 %v262_v19 }
  0x58   :  { %326 = vmatpush.msrb.mxu0 %v260_v21 }
  0x5a   :  { %327 = vmatpush.msrb.mxu0 %v258_v23 }
  0x5c   :  { %328 = vmatpush.msrb.mxu0 %v256_v25 }
  0xba   :  { %v167_v46 = vpop.f32.mrf.mxu0 }
  0xbb   :  { %v690_v47 = vadd.f32 %v388_v45, %v167_v46 }
  0xbd   :  { %v170_v48 = vmax.f32 %v690_v47, 0.0 }
  0xbf   :  { %207 = vmatmul.f32.vlgmr.msra.gmra.mxu1 %v170_v48 }
 0x13c   :  { %v208_v14 = vpop.f32.mrf.mxu1 }
 0x13d   :  { %v209_v15 = vadd.f32 %v389_v13, %v208_v14 }
 0x13f   :  { %v211_v16 = vmax.f32 %v209_v15, 0.0 }
 0x141   :  { %v212_v17 = vadd.f32 %v211_v16, %v170_v48 }
 0x143   :  { %249 = vmatmul.f32.vlgmr.msra.gmra.mxu2 %v212_v17 }
 0x1c6   :  { %v250_v27 = vpop.f32.mrf.mxu2 }
 0x1c7   :  { %v251_v28 = vadd.f32 %v390_v26, %v250_v27 }
 0x1c9   :  { %v253_v29 = vmax.f32 %v251_v28, 0.0 }
 0x1cb   :  { %v254_v30 = vadd.f32 %v253_v29, %v212_v17 }
 0x1cd   :  { %309 = vmatmul.f32.vlgmr.msra.gmra.mxu3 %v254_v30  ;;  %329 = vmatmul.f32.vlgmr.msrb.gmra.mxu0 %v254_v30 }
 0x24a   :  { %v330_v37 = vpop.f32.mrf.mxu0 }
 0x24b   :  { %v331_v40 = vadd.f32 %v330_v37, %v290_v36 }
 0x250   :  { %v310_v33 = vpop.f32.mrf.mxu3 }
 0x251   :  { %v311_v34 = vadd.f32 %v310_v33, %v289_v32 }
 0x253   :  { %v334_v35 = vmul.f32 1.442695, %v311_v34  ;;  %339 = vst [vmem:[#allocation14] sm:$0xff] %v311_v34 }
 0x254   :  { %361 = dma.vmem_to_hbm [thread:$0]  %s357_s13, 128, %s359_s16, [#allocation15]  }
 0x255   :  { %391 = vpow2.f32 %v334_v35 }
 0x25b   :  { %v392_v39 = vpop.eup %391 }
 0x25c   :  { %v336_v41 = vmul.f32 %v392_v39, %v333_v38 }
 0x25e   :  { %v337_v42 = vadd.f32 %v336_v41, %v331_v40 }
 0x260   :  { %338 = vst [vmem:[#allocation13] sm:$0xff] %v337_v42 }
 0x261   :  { %350 = dma.vmem_to_hbm [thread:$0]  %s346_s9, 128, %s348_s18, [#allocation4]  }
 0x262   :  { %593 = dma.done.wait [#allocation4], 128  }
 0x263   :  { %594 = vsyncadd [#allocation4], 4294967168 }
 0x264   :  { %595 = dma.done.wait [#allocation15], 128  }
 0x265   :  { %596 = vsyncadd [#allocation15], 4294967168 }
 0x266   :  { %370 = vsyncpa [#allocation3], 1 }
 0x267   :  { %371 = vsyncpa [#allocation6], 1 }
 0x268   :  { %372 = vsyncpa [#allocation9], 1 }
 0x269   :  { %373 = vsyncpa [#allocation12], 1 }
 0x26a   :  { %374 = vsyncpa [#allocation4], 1 }
 0x26b   :  { %375 = vsyncpa [#allocation15], 1 }

</bundles_post_ra>
